<compile_context>
chip_gen: v6e
topology: v6e:2x2x1
jax: 0.10.0
libtpu: 0.0.40
codegen_flags: <defaults>
</compile_context>

<pallas_src>
import math

import jax
import jax.numpy as jnp
from jax.experimental import pallas as pl
from jax.experimental.pallas import tpu as pltpu

LANE = 128
_HALF_LOG_2PI = 0.5 * math.log(2.0 * math.pi)


def _logprob_kernel(t_ref, mu_ref, ls_ref, out_ref):
    """Lane-dense partial sums of Normal log-probs over feature tiles.

    t_ref/mu_ref/ls_ref: (tn, tk) tiles of targets, loc, log-scale (native dtype;
        upcast to f32 in-kernel so bf16/fp16 inputs stream at half the HBM bytes).
    out_ref: (tn, 128) f32 partial-sum accumulator, resident across the feature
        (reduction) grid axis. No XLU cross-lane reduce and no narrow masked
        store inside the hot loop; the per-element -0.5*log(2*pi) constant is
        applied once in the wrapper.
    """
    k = pl.program_id(1)

    @pl.when(k == 0)
    def _():
        out_ref[...] = jnp.zeros_like(out_ref)

    x = t_ref[...].astype(jnp.float32) + 1e-08      # targets + 1e-8 (as in module)
    mu = mu_ref[...].astype(jnp.float32)
    log_sigma = ls_ref[...].astype(jnp.float32)
    z = (x - mu) * jnp.exp(-log_sigma)
    lp = -0.5 * (z * z) - log_sigma                 # (tn, tk)

    # Fold tk into 128-wide chunks with pure VPU adds (static, vreg-aligned slices).
    tk = lp.shape[-1]
    acc = lp[:, 0:LANE]
    for c in range(1, tk // LANE):
        acc = acc + lp[:, c * LANE:(c + 1) * LANE]
    out_ref[...] += acc


def _pad2d(a, rows_pad, cols_pad, value):
    if rows_pad or cols_pad:
        a = jnp.pad(a, ((0, rows_pad), (0, cols_pad)), constant_values=value)
    return a


def per_example_logprob(targets_flat, loc_flat, log_scale_flat):
    """targets/loc/log_scale: (N, D) float arrays (any float dtype).
    Returns (N,) f32 per-example sums of Normal(loc, exp(log_scale)).log_prob(targets + 1e-8).
    """
    n, d = targets_flat.shape

    # --- pad the feature dim to a multiple of 128 with neutral values (lp == 0) ---
    d_pad = (-d) % LANE
    t = _pad2d(targets_flat, 0, d_pad, -1e-08)
    mu = _pad2d(loc_flat, 0, d_pad, 0.0)
    ls = _pad2d(log_scale_flat, 0, d_pad, 0.0)
    d_p = d + d_pad

    # --- tiny batch: fold contiguous feature chunks into rows to fill sublanes ---
    fold = 1
    while (n * fold < 8 and d_p % (2 * fold) == 0
           and (d_p // (2 * fold)) % LANE == 0):
        fold *= 2
    rows = n * fold
    d2 = d_p // fold
    t = t.reshape(rows, d2)
    mu = mu.reshape(rows, d2)
    ls = ls.reshape(rows, d2)

    # --- pad rows to a multiple of 8 (sublane) with neutral values ---
    r_pad = (-rows) % 8
    t = _pad2d(t, r_pad, 0, -1e-08)
    mu = _pad2d(mu, r_pad, 0, 0.0)
    ls = _pad2d(ls, r_pad, 0, 0.0)
    rows_p = rows + r_pad

    # --- tile selection: largest lane tile <= 2048 dividing d2; largest row tile
    #     that keeps a double-buffered f32 block within a modest VMEM budget ---
    tk = LANE
    for cand in range(2048, LANE - 1, -LANE):
        if d2 % cand == 0:
            tk = cand
            break
    tn = 8
    for cand in (256, 128, 64, 32, 16, 8):
        if rows_p % cand == 0 and cand * tk * 4 <= 2 * 1024 * 1024:
            tn = cand
            break

    grid = (rows_p // tn, d2 // tk)
    itemsize = jnp.dtype(targets_flat.dtype).itemsize
    cost = pl.CostEstimate(
        flops=6 * rows_p * d2,
        transcendentals=rows_p * d2,
        bytes_accessed=3 * rows_p * d2 * itemsize + rows_p * LANE * 4,
    )

    partial = pl.pallas_call(
        _logprob_kernel,
        out_shape=jax.ShapeDtypeStruct((rows_p, LANE), jnp.float32),
        grid_spec=pltpu.PrefetchScalarGridSpec(
            num_scalar_prefetch=0,
            grid=grid,
            in_specs=[
                pl.BlockSpec((tn, tk), lambda i, k: (i, k)),
                pl.BlockSpec((tn, tk), lambda i, k: (i, k)),
                pl.BlockSpec((tn, tk), lambda i, k: (i, k)),
            ],
            out_specs=pl.BlockSpec((tn, LANE), lambda i, k: (i, 0)),
        ),
        compiler_params=pltpu.CompilerParams(
            # batch axis parallel (lets v7x use both TCs), feature axis is the reduction
            dimension_semantics=("parallel", "arbitrary"),
            vmem_limit_bytes=32 * 1024 * 1024,
        ),
        cost_estimate=cost,
    )(t, mu, ls)

    # Finalize on the tiny (rows_p, 128) partial array in plain JAX.
    row_sums = jnp.sum(partial, axis=-1)[:rows]                 # (rows,)
    per_example = jnp.sum(row_sums.reshape(n, fold), axis=1)    # (N,)
    # Apply the -0.5*log(2*pi) constant once per true (unpadded) element.
    return per_example - d * _HALF_LOG_2PI


def log_prob_loss(targets, loc, log_scale, data_shape, global_batch_size=128):
    """JAX/Pallas equivalent of LogProb.forward with a Normal distribution.

    targets/loc/log_scale: (N, C, H, W) (any float dtype; kernel upcasts to f32).
    Returns (loss, avg_loss) scalars.
    """
    n = targets.shape[0]
    d = int(math.prod(targets.shape[1:]))

    # Keep native dtype here (no wrapper-side astype) — the kernel upcasts tiles.
    t_flat = targets.reshape(n, d)
    mu_flat = loc.reshape(n, d)
    ls_flat = log_scale.reshape(n, d)

    per_example_loss = per_example_logprob(t_flat, mu_flat, ls_flat)  # (N,) f32

    scalar = global_batch_size * float(math.prod(data_shape))
    loss = jnp.sum(per_example_loss) / scalar

    avg_per_example_loss = per_example_loss / float(d)
    avg_loss = jnp.sum(avg_per_example_loss) / (global_batch_size * math.log(2.0))
    return loss, avg_loss


if __name__ == "__main__":
    key = jax.random.PRNGKey(0)
    k1, k2, k3 = jax.random.split(key, 3)

    N, C, H, W = 2, 4, 16, 16
    data_shape = (C, H, W)

    targets = jax.random.uniform(k1, (N, C, H, W), dtype=jnp.float32)
    # Deterministic "distribution" parameters (Normal: loc, log-scale).
    loc = jax.random.normal(k2, (N, C, H, W), dtype=jnp.float32) * 0.1
    log_scale = jax.random.normal(k3, (N, C, H, W), dtype=jnp.float32) * 0.05

    loss, avg_loss = log_prob_loss(targets, loc, log_scale, data_shape,
                                   global_batch_size=128)
    jax.block_until_ready((loss, avg_loss))

    # Pure-JAX reference check of the elementwise+reduction hot path.
    z = ((targets + 1e-08) - loc) * jnp.exp(-log_scale)
    lp_ref = -0.5 * z * z - log_scale - 0.5 * math.log(2.0 * math.pi)
    pel_ref = lp_ref.reshape(N, -1).sum(axis=1)
    loss_ref = pel_ref.sum() / (128 * math.prod(data_shape))
    avg_loss_ref = (pel_ref / (C * H * W)).sum() / (128 * math.log(2.0))
    assert jnp.allclose(loss, loss_ref, rtol=1e-5, atol=1e-6)
    assert jnp.allclose(avg_loss, avg_loss_ref, rtol=1e-5, atol=1e-6)

    print("KERNEL_OK")
</pallas_src>

<mosaic_0001>
module attributes {stable_mosaic.version = 11 : i64} {
  func.func @_logprob_kernel(%arg0: i32, %arg1: i32, %arg2: memref<8x256xf32, #tpu.memory_space<vmem>>, %arg3: memref<8x256xf32, #tpu.memory_space<vmem>>, %arg4: memref<8x256xf32, #tpu.memory_space<vmem>>, %arg5: memref<8x128xf32, #tpu.memory_space<vmem>>) attributes {dimension_semantics = [#tpu.dimension_semantics<parallel>, #tpu.dimension_semantics<arbitrary>], iteration_bounds = array<i64: 1, 1>, scalar_prefetch = 0 : i64, scratch_operands = 0 : i64, tpu.core_type = #tpu.core_type<tc>, window_params = [{transform_indices = @transform_0, window_bounds = array<i64: 8, 256>}, {transform_indices = @transform_1, window_bounds = array<i64: 8, 256>}, {transform_indices = @transform_2, window_bounds = array<i64: 8, 256>}, {transform_indices = @transform_3, window_bounds = array<i64: 8, 128>}]} {
    %c0_i32 = arith.constant 0 : i32
    %0 = arith.cmpi eq, %arg1, %c0_i32 : i32
    %1 = arith.extui %0 : i1 to i32
    %c0_i32_0 = arith.constant 0 : i32
    %2 = arith.cmpi ne, %1, %c0_i32_0 : i32
    scf.if %2 {
      %cst_12 = arith.constant 0.000000e+00 : f32
      %23 = vector.broadcast %cst_12 : f32 to vector<8x128xf32>
      %c0_13 = arith.constant 0 : index
      %c0_14 = arith.constant 0 : index
      %24 = vector.load %arg5[%c0_13, %c0_14] : memref<8x128xf32, #tpu.memory_space<vmem>>, vector<8x128xf32>
      tpu.vector_store %arg5[%c0_13, %c0_14], %23 {strides = array<i32>} : memref<8x128xf32, #tpu.memory_space<vmem>>, vector<8x128xf32>,
    } else {
    }
    %c0 = arith.constant 0 : index
    %c0_1 = arith.constant 0 : index
    %3 = vector.load %arg2[%c0, %c0_1] : memref<8x256xf32, #tpu.memory_space<vmem>>, vector<8x256xf32>
    %cst = arith.constant 9.99999993E-9 : f32
    %4 = vector.broadcast %cst : f32 to vector<8x256xf32>
    %5 = arith.addf %3, %4 : vector<8x256xf32>
    %c0_2 = arith.constant 0 : index
    %c0_3 = arith.constant 0 : index
    %6 = vector.load %arg3[%c0_2, %c0_3] : memref<8x256xf32, #tpu.memory_space<vmem>>, vector<8x256xf32>
    %c0_4 = arith.constant 0 : index
    %c0_5 = arith.constant 0 : index
    %7 = vector.load %arg4[%c0_4, %c0_5] : memref<8x256xf32, #tpu.memory_space<vmem>>, vector<8x256xf32>
    %8 = arith.subf %5, %6 : vector<8x256xf32>
    %cst_6 = arith.constant 0.000000e+00 : f32
    %9 = vector.broadcast %cst_6 : f32 to vector<8x256xf32>
    %10 = arith.subf %9, %7 : vector<8x256xf32>
    %11 = math.exp %10 : vector<8x256xf32>
    %12 = arith.mulf %8, %11 : vector<8x256xf32>
    %13 = arith.mulf %12, %12 : vector<8x256xf32>
    %cst_7 = arith.constant -5.000000e-01 : f32
    %14 = vector.broadcast %cst_7 : f32 to vector<8x256xf32>
    %15 = arith.mulf %14, %13 : vector<8x256xf32>
    %16 = arith.subf %15, %7 : vector<8x256xf32>
    %17 = vector.extract_strided_slice %16 {offsets = [0, 0], sizes = [8, 128], strides = [1, 1]} : vector<8x256xf32> to vector<8x128xf32>
    %18 = vector.extract_strided_slice %16 {offsets = [0, 128], sizes = [8, 128], strides = [1, 1]} : vector<8x256xf32> to vector<8x128xf32>
    %19 = arith.addf %17, %18 : vector<8x128xf32>
    %c0_8 = arith.constant 0 : index
    %c0_9 = arith.constant 0 : index
    %20 = vector.load %arg5[%c0_8, %c0_9] : memref<8x128xf32, #tpu.memory_space<vmem>>, vector<8x128xf32>
    %21 = arith.addf %20, %19 : vector<8x128xf32>
    %c0_10 = arith.constant 0 : index
    %c0_11 = arith.constant 0 : index
    %22 = vector.load %arg5[%c0_10, %c0_11] : memref<8x128xf32, #tpu.memory_space<vmem>>, vector<8x128xf32>
    tpu.vector_store %arg5[%c0_10, %c0_11], %21 {strides = array<i32>} : memref<8x128xf32, #tpu.memory_space<vmem>>, vector<8x128xf32>,
    return
  }
  func.func @transform_0(%arg0: i32, %arg1: i32) -> (i32, i32) {
    %c0_i32 = arith.constant 0 : i32
    return %arg0, %arg1 : i32, i32
  }
  func.func @transform_1(%arg0: i32, %arg1: i32) -> (i32, i32) {
    %c0_i32 = arith.constant 0 : i32
    return %arg0, %arg1 : i32, i32
  }
  func.func @transform_2(%arg0: i32, %arg1: i32) -> (i32, i32) {
    %c0_i32 = arith.constant 0 : i32
    return %arg0, %arg1 : i32, i32
  }
  func.func @transform_3(%arg0: i32, %arg1: i32) -> (i32, i32) {
    %c0_i32 = arith.constant 0 : i32
    %c0_i32_0 = arith.constant 0 : i32
    return %arg0, %c0_i32 : i32, i32
  }
}

</mosaic_0001>

<bundles_post_ra>
// kernel: tpu_custom_call.1
= control target key start
LH: loop header
LB: loop body
LE: loop exit
PB: predicated region body
PF: predicated region fallthrough
CT: control target
= control target key end

     0   :  { %8 = vsyncpa [#allocation3], 0  ;;  %s230_s0 = inlined_call_operand.hbm [shape: f32[8,256], index: 0, kind: input, shape index: {}]   ;;  %s231_s1 = inlined_call_operand.hbm [shape: f32[8,256], index: 1, kind: input, shape index: {}]   ;;  %s232_s2 = inlined_call_operand.hbm [shape: f32[8,256], index: 2, kind: input, shape index: {}]   ;;  %s233_s3 = inlined_call_operand.hbm [shape: f32[8,128], index: 3, kind: output, shape index: {}]  }
   0x1   :  { %9 = vsyncpa [#allocation6], 0 }
   0x2   :  { %10 = vsyncpa [#allocation4], 0  ;;  %s194_s12 = smov [#allocation5]   ;;  %s195_s14 = smov [#allocation2]  }
   0x3   :  { %s27_s13 = sshll.u32 %s194_s12, 4  ;;  %s17_s15 = sshll.u32 %s195_s14, 4  ;;  %s28_s13 = int_to_ptr.vmem [resolvable:$true] %s27_s13  ;;  %s18_s15 = int_to_ptr.vmem [resolvable:$true] %s17_s15 }
   0x4   :  { %s116_s16 = scalar_lea.vmem %s28_s13, 256  ;;  %p121_p1 = scmp.lt.s32.totalorder %s28_s13, %s28_s13 }
   0x5   :  { %p117_p0 = scmp.ne.s32.totalorder %s28_s13, %s116_s16  ;;  %p122_p2 = scmp.lt.s32.totalorder %s116_s16, %s116_s16 }
   0x7   :  { %p123_p3 = por %p122_p2, %p121_p1 }
   0x9   :  { %p124_p4 = pnand %p123_p3, %p117_p0 }
   0xb   :  { %127 = shalt.err (!%p124_p4)
}
   0xc   :  { %30 = dma.hbm_to_vmem [thread:$0]  %s231_s1, 256, %s28_s13, [#allocation6]  }
   0xd   :  { %s136_s19 = scalar_lea.vmem %s18_s15, 256  ;;  %p141_p6 = scmp.lt.s32.totalorder %s18_s15, %s18_s15 }
   0xe   :  { %p137_p5 = scmp.ne.s32.totalorder %s18_s15, %s136_s19  ;;  %p142_p7 = scmp.lt.s32.totalorder %s136_s19, %s136_s19 }
  0x10   :  { %p143_p8 = por %p142_p7, %p141_p6 }
  0x12   :  { %p144_p9 = pnand %p143_p8, %p137_p5 }
  0x14   :  { %147 = shalt.err (!%p144_p9)
}
  0x15   :  { %20 = dma.hbm_to_vmem [thread:$0]  %s230_s0, 256, %s18_s15, [#allocation3]  }
  0x16   :  { %s196_s22 = smov [#allocation7]  }
  0x17   :  { %s37_s23 = sshll.u32 %s196_s22, 4  ;;  %s38_s23 = int_to_ptr.vmem [resolvable:$true] %s37_s23 }
  0x18   :  { %s156_s24 = scalar_lea.vmem %s38_s23, 256  ;;  %p161_p11 = scmp.lt.s32.totalorder %s38_s23, %s38_s23 }
  0x19   :  { %p157_p10 = scmp.ne.s32.totalorder %s38_s23, %s156_s24  ;;  %p162_p12 = scmp.lt.s32.totalorder %s156_s24, %s156_s24 }
  0x1b   :  { %p163_p13 = por %p162_p12, %p161_p11 }
  0x1d   :  { %p164_p0 = pnand %p163_p13, %p157_p10 }
  0x1f   :  { %167 = shalt.err (!%p164_p0)
}
  0x20   :  { %40 = dma.hbm_to_vmem [thread:$0]  %s232_s2, 256, %s38_s23, [#allocation6]  }
  0x21   :  { %188 = dma.done.wait [#allocation3], 256  }
  0x22   :  { %189 = vsyncadd [#allocation3], 4294967040 }
  0x23   :  { %190 = dma.done.wait [#allocation6], 512  }
  0x24   :  { %191 = vsyncadd [#allocation6], 4294966784  ;;  %v61_v0 = vld [vmem:[#allocation7] sm:$0xff]  ;;  %v62_v1 = vld [vmem:[#allocation7 + $0x8] sm:$0xff]  ;;  %s197_s0 = smov [#allocation8]  }
  0x25   :  { %v65_v2 = vsub.f32 0.0, %v61_v0  ;;  %v66_v3 = vsub.f32 0.0, %v62_v1  ;;  %v55_v6 = vld [vmem:[#allocation2] sm:$0xff]  ;;  %v56_v7 = vld [vmem:[#allocation2 + $0x8] sm:$0xff]  ;;  %v59_v10 = vld [vmem:[#allocation5] sm:$0xff]  ;;  %s89_s2 = sshll.u32 %s197_s0, 4  ;;  %s90_s2 = int_to_ptr.vmem [resolvable:$true] %s89_s2 }
  0x26   :  { %v57_v8 = vadd.f32 1e-08, %v55_v6  ;;  %v58_v9 = vadd.f32 1e-08, %v56_v7  ;;  %v60_v11 = vld [vmem:[#allocation5 + $0x8] sm:$0xff]  ;;  %s168_s26 = scalar_lea.vmem %s90_s2, 128  ;;  %p173_p2 = scmp.lt.s32.totalorder %s90_s2, %s90_s2 }
  0x27   :  { %v67_v4 = vmul.f32 1.442695, %v65_v2  ;;  %v69_v5 = vmul.f32 1.442695, %v66_v3  ;;  %p169_p1 = scmp.ne.s32.totalorder %s90_s2, %s168_s26  ;;  %p174_p3 = scmp.lt.s32.totalorder %s168_s26, %s168_s26 }
  0x28   :  { %v63_v12 = vsub.f32 %v57_v8, %v59_v10  ;;  %v64_v13 = vsub.f32 %v58_v9, %v60_v11 }
  0x29   :  { %104 = vpow2.f32 %v67_v4  ;;  %p175_p4 = por %p174_p3, %p173_p2 }
  0x2a   :  { %106 = vpow2.f32 %v69_v5 }
  0x2b   :  { %p176_p5 = pnand %p175_p4, %p169_p1 }
  0x36   :  { %v105_v14 = vpop.eup %104 }
  0x37   :  { %v107_v15 = vpop.eup %106  ;;  %v71_v16 = vmul.f32 %v105_v14, %v63_v12 }
  0x38   :  { %v72_v17 = vmul.f32 %v107_v15, %v64_v13 }
  0x39   :  { %v73_v18 = vmul.f32 %v71_v16, %v71_v16 }
  0x3a   :  { %v74_v19 = vmul.f32 %v72_v17, %v72_v17 }
  0x3b   :  { %v75_v20 = vmul.f32 -0.5, %v73_v18 }
  0x3c   :  { %v76_v21 = vmul.f32 -0.5, %v74_v19 }
  0x3d   :  { %v77_v22 = vsub.f32 %v75_v20, %v61_v0 }
  0x3e   :  { %v78_v23 = vsub.f32 %v76_v21, %v62_v1 }
  0x40   :  { %v79_v24 = vadd.f32 %v78_v23, %v77_v22 }
  0x42   :  { %82 = vst [vmem:[#allocation8] sm:$0xff] %v79_v24 }
  0x43   :  { %179 = shalt.err (!%p176_p5)
}
  0x44   :  { %92 = dma.vmem_to_hbm [thread:$0]  %s90_s2, 128, %s233_s3, [#allocation4]  }
  0x45   :  { %192 = dma.done.wait [#allocation4], 128  }
  0x46   :  { %193 = vsyncadd [#allocation4], 4294967168 }
  0x47   :  { %96 = vsyncpa [#allocation3], 1 }
  0x48   :  { %97 = vsyncpa [#allocation6], 1 }
  0x49   :  { %98 = vsyncpa [#allocation4], 1 }

</bundles_post_ra>
